<compile_context>
chip_gen: v7x
topology: tpu7x:2x2x1
jax: 0.10.0
libtpu: 0.0.40
codegen_flags: <defaults>
</compile_context>

<pallas_src>
import jax
import jax.numpy as jnp
from jax.experimental import pallas as pl
from jax.experimental.pallas import tpu as pltpu

MAX_TILE_E = 4096  # edges (lanes) per grid step; multiple of 128


def _fused_head_kernel(y_ref, x_ref, w_ref, b_ref, p2_ref, zs_ref, zd_ref,
                       pred_ref, bce_ref, regsum_ref):
    # Lane-dense layout (edges on lanes):
    #   x_ref : [H, TE]  edge embeddings (transposed)
    #   w_ref : [H, 1]   predict-Linear weight column (broadcast over lanes)
    #   b_ref : [1, 1]   bias scalar in SMEM
    #   y/p2  : [1, TE]
    #   zs/zd : [D, TE]  gathered node embeddings (transposed)
    x_t = x_ref[...]
    w = w_ref[...]
    b = b_ref[0, 0]

    # Linear(H -> 1) as VPU multiply + sublane reduce (no degenerate MXU matvec).
    logits1 = jnp.sum(x_t * w, axis=0, keepdims=True) + b          # [1, TE]
    p1 = jax.nn.sigmoid(logits1)                                   # predict1
    p2 = jax.nn.sigmoid(p2_ref[...])                               # predict2
    pred = 0.5 * p1 + 0.5 * p2                                     # blended predict
    pred_ref[...] = pred

    # binary_cross_entropy(predict, y, reduction='none')
    yv = y_ref[...]
    eps = 1e-7  # f32-resolvable clamp (1e-12 rounds away near 1.0)
    pc = jnp.clip(pred, eps, 1.0 - eps)
    bce_ref[...] = -(yv * jnp.log(pc) + (1.0 - yv) * jnp.log(1.0 - pc))

    # InnerProductDecoder: sigmoid(<z_src, z_dst>) per edge, lane-dense.
    ip = jnp.sum(zs_ref[...] * zd_ref[...], axis=0, keepdims=True)  # [1, TE]
    label_rectifier = jax.nn.sigmoid(ip)

    # torch.norm(label_rectifier - predict1, dim=1, p=2) over a size-1 dim == abs.
    # Fuse the mean's numerator: accumulate a partial sum across grid steps.
    partial = jnp.sum(jnp.abs(label_rectifier - p1))

    @pl.when(pl.program_id(0) == 0)
    def _():
        regsum_ref[...] = jnp.zeros_like(regsum_ref)
    regsum_ref[...] += partial


def fused_head(y_t, x_t, w, b, p2_t, zs_t, zd_t):
    H, E = x_t.shape
    D = zs_t.shape[0]
    TE = E if E <= MAX_TILE_E else MAX_TILE_E
    assert E % 128 == 0 and E % TE == 0, "edge count must be a multiple of 128"
    grid = (E // TE,)

    lane_spec = pl.BlockSpec((1, TE), lambda i: (0, i))
    return pl.pallas_call(
        _fused_head_kernel,
        out_shape=(
            jax.ShapeDtypeStruct((1, E), jnp.float32),   # predict
            jax.ShapeDtypeStruct((1, E), jnp.float32),   # per-edge BCE
            jax.ShapeDtypeStruct((1, 1), jnp.float32),   # sum |label_rectifier - p1|
        ),
        grid_spec=pltpu.PrefetchScalarGridSpec(
            num_scalar_prefetch=0,
            grid=grid,
            in_specs=[
                lane_spec,                                          # y          [1,E]
                pl.BlockSpec((H, TE), lambda i: (0, i)),            # edges_emb^T[H,E]
                pl.BlockSpec((H, 1), lambda i: (0, 0)),             # W          [H,1]
                pl.BlockSpec(memory_space=pltpu.MemorySpace.SMEM),  # b scalar   [1,1]
                lane_spec,                                          # p2 logits  [1,E]
                pl.BlockSpec((D, TE), lambda i: (0, i)),            # z[src]^T   [D,E]
                pl.BlockSpec((D, TE), lambda i: (0, i)),            # z[dst]^T   [D,E]
            ],
            out_specs=[
                lane_spec,                                          # predict
                lane_spec,                                          # bce
                pl.BlockSpec((1, 1), lambda i: (0, 0)),             # resident reg accum
            ],
        ),
        compiler_params=pltpu.CompilerParams(
            dimension_semantics=("arbitrary",)),  # reg accumulator spans grid axis
    )(y_t, x_t, w, b, p2_t, zs_t, zd_t)


def model_forward(y, edges_embeddings, w, b, landmark_logits, z, edges_snap,
                  window_size=4, num_snaps=3, zloss=0.0):
    """Mirrors the tail of Model.forward (losses + predictions)."""
    E, H = edges_embeddings.shape

    # Layout plumbing only: put edges on the lane axis.
    x_t = edges_embeddings.T                 # [H, E]
    y_t = y.reshape(1, E)                    # [1, E]
    p2_t = landmark_logits.reshape(1, E)     # [1, E]
    z_t = z.T                                # [D, N]
    zs_t = z_t[:, edges_snap[:, 0]]          # [D, E]
    zd_t = z_t[:, edges_snap[:, 1]]          # [D, E]
    # TODO(synk): at realistic E the z gather could be fused into the kernel
    # (scalar-prefetch edges_snap + in-kernel gather/DMA) to skip the HBM round
    # trip of the gathered copies.

    pred_t, bce_t, reg_sum = fused_head(y_t, x_t, w, b, p2_t, zs_t, zd_t)

    predict = pred_t.reshape(E, 1)
    bce_loss = bce_t.reshape(E, 1)
    reg_loss = reg_sum[0, 0] / E + zloss
    # len(all_z) <= window_size branch -> contrastive loss skipped
    nce_loss = 0.0 if num_snaps <= window_size else 0.0
    # TODO(synk): Contrastive2 NCE loss over the all_z history has no definition here.
    return bce_loss, reg_loss, nce_loss, predict


if __name__ == "__main__":
    key = jax.random.PRNGKey(0)
    k1, k2, k3, k4, k5, k6, k7, k8 = jax.random.split(key, 8)

    E = 128   # number of edges in the snapshot (multiple of 128)
    H = 32    # hidden_size_HANLayer * num_heads_HANLayer
    D = 16    # node embedding dim (all_z[-1])
    N = 64    # number of nodes

    edges_embeddings = jax.random.normal(k1, (E, H), dtype=jnp.float32)
    y = jax.random.bernoulli(k2, 0.5, (E, 1)).astype(jnp.float32)
    landmark_logits = jax.random.normal(k3, (E, 1), dtype=jnp.float32)
    z = jax.random.normal(k4, (N, D), dtype=jnp.float32) * 0.3
    edges_snap = jax.random.randint(k5, (E, 2), 0, N, dtype=jnp.int32)

    # self.predict = nn.Linear(H, 1) — deterministic init
    w = jax.random.normal(k6, (H, 1), dtype=jnp.float32) / jnp.sqrt(H)
    b = jax.random.normal(k7, (1, 1), dtype=jnp.float32) * 0.01

    bce_loss, reg_loss, nce_loss, predict = model_forward(
        y, edges_embeddings, w, b, landmark_logits, z, edges_snap)

    jax.block_until_ready((bce_loss, reg_loss, predict))

    # sanity vs. plain-JAX reference
    p1_ref = jax.nn.sigmoid(edges_embeddings @ w + b[0, 0])
    p2_ref = jax.nn.sigmoid(landmark_logits)
    pred_ref = 0.5 * p1_ref + 0.5 * p2_ref
    bce_ref = -(y * jnp.log(pred_ref) + (1 - y) * jnp.log(1 - pred_ref))
    lr_ref = jax.nn.sigmoid(
        jnp.sum(z[edges_snap[:, 0]] * z[edges_snap[:, 1]], axis=-1, keepdims=True))
    reg_ref = jnp.mean(jnp.abs(lr_ref - p1_ref))

    assert jnp.allclose(predict, pred_ref, atol=1e-5), "predict mismatch"
    assert jnp.allclose(bce_loss, bce_ref, atol=1e-4), "bce mismatch"
    assert jnp.allclose(reg_loss, reg_ref, atol=1e-5), "reg mismatch"

    print("KERNEL_OK")
</pallas_src>

<mosaic_0001>
module attributes {stable_mosaic.version = 11 : i64} {
  func.func @_fused_head_kernel(%arg0: i32, %arg1: memref<1x128xf32, #tpu.memory_space<vmem>>, %arg2: memref<32x128xf32, #tpu.memory_space<vmem>>, %arg3: memref<32x1xf32, #tpu.memory_space<vmem>>, %arg4: memref<1x1xf32, #tpu.memory_space<smem>>, %arg5: memref<1x128xf32, #tpu.memory_space<vmem>>, %arg6: memref<16x128xf32, #tpu.memory_space<vmem>>, %arg7: memref<16x128xf32, #tpu.memory_space<vmem>>, %arg8: memref<1x128xf32, #tpu.memory_space<vmem>>, %arg9: memref<1x128xf32, #tpu.memory_space<vmem>>, %arg10: memref<1x1xf32, #tpu.memory_space<vmem>>) attributes {dimension_semantics = [#tpu.dimension_semantics<arbitrary>], iteration_bounds = array<i64: 1>, scalar_prefetch = 0 : i64, scratch_operands = 0 : i64, tpu.core_type = #tpu.core_type<tc>, window_params = [{transform_indices = @transform_0, window_bounds = array<i64: 1, 128>}, {transform_indices = @transform_1, window_bounds = array<i64: 32, 128>}, {pipeline_mode = #tpu.pipeline_mode<synchronous>, transform_indices = @transform_2, window_bounds = array<i64: 32, 1>}, {transform_indices = @transform_3, window_bounds = array<i64: 1, 1>}, {transform_indices = @transform_4, window_bounds = array<i64: 1, 128>}, {transform_indices = @transform_5, window_bounds = array<i64: 16, 128>}, {transform_indices = @transform_6, window_bounds = array<i64: 16, 128>}, {transform_indices = @transform_7, window_bounds = array<i64: 1, 128>}, {transform_indices = @transform_8, window_bounds = array<i64: 1, 128>}, {pipeline_mode = #tpu.pipeline_mode<synchronous>, transform_indices = @transform_9, window_bounds = array<i64: 1, 1>}]} {
    %c0 = arith.constant 0 : index
    %c0_0 = arith.constant 0 : index
    %0 = vector.load %arg2[%c0, %c0_0] : memref<32x128xf32, #tpu.memory_space<vmem>>, vector<32x128xf32>
    %c0_1 = arith.constant 0 : index
    %c0_2 = arith.constant 0 : index
    %1 = vector.load %arg3[%c0_1, %c0_2] : memref<32x1xf32, #tpu.memory_space<vmem>>, vector<32x1xf32>
    %c0_3 = arith.constant 0 : index
    %c0_4 = arith.constant 0 : index
    %2 = memref.load %arg4[%c0_3, %c0_4] : memref<1x1xf32, #tpu.memory_space<smem>>
    %3 = vector.broadcast %1 : vector<32x1xf32> to vector<32x128xf32>
    %4 = arith.mulf %0, %3 : vector<32x128xf32>
    %cst = arith.constant dense<0.000000e+00> : vector<128xf32>
    %5 = vector.multi_reduction <add>, %4, %cst [0] : vector<32x128xf32> to vector<128xf32>
    %6 = vector.shape_cast %5 : vector<128xf32> to vector<1x128xf32>
    %7 = vector.broadcast %2 : f32 to vector<1x128xf32>
    %8 = arith.addf %6, %7 : vector<1x128xf32>
    %9 = arith.negf %8 : vector<1x128xf32>
    %10 = math.exp %9 : vector<1x128xf32>
    %cst_5 = arith.constant 1.000000e+00 : f32
    %11 = vector.broadcast %cst_5 : f32 to vector<1x128xf32>
    %12 = arith.addf %11, %10 : vector<1x128xf32>
    %13 = arith.divf %11, %12 : vector<1x128xf32>
    %c0_6 = arith.constant 0 : index
    %c0_7 = arith.constant 0 : index
    %14 = vector.load %arg5[%c0_6, %c0_7] : memref<1x128xf32, #tpu.memory_space<vmem>>, vector<1x128xf32>
    %15 = arith.negf %14 : vector<1x128xf32>
    %16 = math.exp %15 : vector<1x128xf32>
    %cst_8 = arith.constant 1.000000e+00 : f32
    %17 = vector.broadcast %cst_8 : f32 to vector<1x128xf32>
    %18 = arith.addf %17, %16 : vector<1x128xf32>
    %19 = arith.divf %17, %18 : vector<1x128xf32>
    %cst_9 = arith.constant 5.000000e-01 : f32
    %20 = vector.broadcast %cst_9 : f32 to vector<1x128xf32>
    %21 = arith.mulf %20, %13 : vector<1x128xf32>
    %cst_10 = arith.constant 5.000000e-01 : f32
    %22 = vector.broadcast %cst_10 : f32 to vector<1x128xf32>
    %23 = arith.mulf %22, %19 : vector<1x128xf32>
    %24 = arith.addf %21, %23 : vector<1x128xf32>
    %c0_11 = arith.constant 0 : index
    %c0_12 = arith.constant 0 : index
    %25 = vector.load %arg8[%c0_11, %c0_12] : memref<1x128xf32, #tpu.memory_space<vmem>>, vector<1x128xf32>
    tpu.vector_store %arg8[%c0_11, %c0_12], %24 {strides = array<i32>} : memref<1x128xf32, #tpu.memory_space<vmem>>, vector<1x128xf32>,
    %c0_13 = arith.constant 0 : index
    %c0_14 = arith.constant 0 : index
    %26 = vector.load %arg1[%c0_13, %c0_14] : memref<1x128xf32, #tpu.memory_space<vmem>>, vector<1x128xf32>
    %cst_15 = arith.constant 1.000000e-07 : f32
    %cst_16 = arith.constant 0.99999988 : f32
    %27 = vector.broadcast %cst_15 : f32 to vector<1x128xf32>
    %28 = arith.maximumf %27, %24 : vector<1x128xf32>
    %29 = vector.broadcast %cst_16 : f32 to vector<1x128xf32>
    %30 = arith.minimumf %29, %28 : vector<1x128xf32>
    %31 = math.log %30 : vector<1x128xf32>
    %32 = arith.mulf %26, %31 : vector<1x128xf32>
    %cst_17 = arith.constant 1.000000e+00 : f32
    %33 = vector.broadcast %cst_17 : f32 to vector<1x128xf32>
    %34 = arith.subf %33, %26 : vector<1x128xf32>
    %cst_18 = arith.constant 1.000000e+00 : f32
    %35 = vector.broadcast %cst_18 : f32 to vector<1x128xf32>
    %36 = arith.subf %35, %30 : vector<1x128xf32>
    %37 = math.log %36 : vector<1x128xf32>
    %38 = arith.mulf %34, %37 : vector<1x128xf32>
    %39 = arith.addf %32, %38 : vector<1x128xf32>
    %cst_19 = arith.constant 0.000000e+00 : f32
    %40 = vector.broadcast %cst_19 : f32 to vector<1x128xf32>
    %41 = arith.subf %40, %39 : vector<1x128xf32>
    %c0_20 = arith.constant 0 : index
    %c0_21 = arith.constant 0 : index
    %42 = vector.load %arg9[%c0_20, %c0_21] : memref<1x128xf32, #tpu.memory_space<vmem>>, vector<1x128xf32>
    tpu.vector_store %arg9[%c0_20, %c0_21], %41 {strides = array<i32>} : memref<1x128xf32, #tpu.memory_space<vmem>>, vector<1x128xf32>,
    %c0_22 = arith.constant 0 : index
    %c0_23 = arith.constant 0 : index
    %43 = vector.load %arg6[%c0_22, %c0_23] : memref<16x128xf32, #tpu.memory_space<vmem>>, vector<16x128xf32>
    %c0_24 = arith.constant 0 : index
    %c0_25 = arith.constant 0 : index
    %44 = vector.load %arg7[%c0_24, %c0_25] : memref<16x128xf32, #tpu.memory_space<vmem>>, vector<16x128xf32>
    %45 = arith.mulf %43, %44 : vector<16x128xf32>
    %cst_26 = arith.constant dense<0.000000e+00> : vector<128xf32>
    %46 = vector.multi_reduction <add>, %45, %cst_26 [0] : vector<16x128xf32> to vector<128xf32>
    %47 = vector.shape_cast %46 : vector<128xf32> to vector<1x128xf32>
    %48 = arith.negf %47 : vector<1x128xf32>
    %49 = math.exp %48 : vector<1x128xf32>
    %cst_27 = arith.constant 1.000000e+00 : f32
    %50 = vector.broadcast %cst_27 : f32 to vector<1x128xf32>
    %51 = arith.addf %50, %49 : vector<1x128xf32>
    %52 = arith.divf %50, %51 : vector<1x128xf32>
    %53 = arith.subf %52, %13 : vector<1x128xf32>
    %54 = math.absf %53 : vector<1x128xf32>
    %55 = vector.shape_cast %54 : vector<1x128xf32> to vector<1x1x128xf32>
    %cst_28 = arith.constant dense<0.000000e+00> : vector<1xf32>
    %56 = vector.multi_reduction <add>, %55, %cst_28 [1, 2] : vector<1x1x128xf32> to vector<1xf32>
    %57 = vector.shape_cast %56 : vector<1xf32> to vector<1x1x1xf32>
    %58 = vector.extract %57[0, 0, 0] : f32 from vector<1x1x1xf32>
    %c0_i32 = arith.constant 0 : i32
    %59 = arith.cmpi eq, %arg0, %c0_i32 : i32
    %60 = arith.extui %59 : i1 to i32
    %c0_i32_29 = arith.constant 0 : i32
    %61 = arith.cmpi ne, %60, %c0_i32_29 : i32
    scf.if %61 {
      %cst_34 = arith.constant 0.000000e+00 : f32
      %66 = vector.broadcast %cst_34 : f32 to vector<1x1xf32>
      %c0_35 = arith.constant 0 : index
      %c0_36 = arith.constant 0 : index
      %67 = vector.load %arg10[%c0_35, %c0_36] : memref<1x1xf32, #tpu.memory_space<vmem>>, vector<1x1xf32>
      tpu.vector_store %arg10[%c0_35, %c0_36], %66 {strides = array<i32>} : memref<1x1xf32, #tpu.memory_space<vmem>>, vector<1x1xf32>,
    } else {
    }
    %c0_30 = arith.constant 0 : index
    %c0_31 = arith.constant 0 : index
    %62 = vector.load %arg10[%c0_30, %c0_31] : memref<1x1xf32, #tpu.memory_space<vmem>>, vector<1x1xf32>
    %63 = vector.broadcast %58 : f32 to vector<1x1xf32>
    %64 = arith.addf %62, %63 : vector<1x1xf32>
    %c0_32 = arith.constant 0 : index
    %c0_33 = arith.constant 0 : index
    %65 = vector.load %arg10[%c0_32, %c0_33] : memref<1x1xf32, #tpu.memory_space<vmem>>, vector<1x1xf32>
    tpu.vector_store %arg10[%c0_32, %c0_33], %64 {strides = array<i32>} : memref<1x1xf32, #tpu.memory_space<vmem>>, vector<1x1xf32>,
    return
  }
  func.func @transform_0(%arg0: i32) -> (i32, i32) {
    %c0_i32 = arith.constant 0 : i32
    %c0_i32_0 = arith.constant 0 : i32
    return %c0_i32, %arg0 : i32, i32
  }
  func.func @transform_1(%arg0: i32) -> (i32, i32) {
    %c0_i32 = arith.constant 0 : i32
    %c0_i32_0 = arith.constant 0 : i32
    return %c0_i32, %arg0 : i32, i32
  }
  func.func @transform_2(%arg0: i32) -> (i32, i32) {
    %c0_i32 = arith.constant 0 : i32
    %c0_i32_0 = arith.constant 0 : i32
    %c0_i32_1 = arith.constant 0 : i32
    return %c0_i32, %c0_i32_0 : i32, i32
  }
  func.func @transform_3(%arg0: i32) -> (i32, i32) {
    %c0_i32 = arith.constant 0 : i32
    %c0_i32_0 = arith.constant 0 : i32
    %c0_i32_1 = arith.constant 0 : i32
    return %c0_i32, %c0_i32_0 : i32, i32
  }
  func.func @transform_4(%arg0: i32) -> (i32, i32) {
    %c0_i32 = arith.constant 0 : i32
    %c0_i32_0 = arith.constant 0 : i32
    return %c0_i32, %arg0 : i32, i32
  }
  func.func @transform_5(%arg0: i32) -> (i32, i32) {
    %c0_i32 = arith.constant 0 : i32
    %c0_i32_0 = arith.constant 0 : i32
    return %c0_i32, %arg0 : i32, i32
  }
  func.func @transform_6(%arg0: i32) -> (i32, i32) {
    %c0_i32 = arith.constant 0 : i32
    %c0_i32_0 = arith.constant 0 : i32
    return %c0_i32, %arg0 : i32, i32
  }
  func.func @transform_7(%arg0: i32) -> (i32, i32) {
    %c0_i32 = arith.constant 0 : i32
    %c0_i32_0 = arith.constant 0 : i32
    return %c0_i32, %arg0 : i32, i32
  }
  func.func @transform_8(%arg0: i32) -> (i32, i32) {
    %c0_i32 = arith.constant 0 : i32
    %c0_i32_0 = arith.constant 0 : i32
    return %c0_i32, %arg0 : i32, i32
  }
  func.func @transform_9(%arg0: i32) -> (i32, i32) {
    %c0_i32 = arith.constant 0 : i32
    %c0_i32_0 = arith.constant 0 : i32
    %c0_i32_1 = arith.constant 0 : i32
    return %c0_i32, %c0_i32_0 : i32, i32
  }
}

</mosaic_0001>

<bundles_post_ra>
// kernel: tpu_custom_call.1
= control target key start
LH: loop header
LB: loop body
LE: loop exit
PB: predicated region body
PF: predicated region fallthrough
CT: control target
= control target key end

     0   :  { %16 = vsyncpa [#allocation4], 0  ;;  %s570_s0 = inlined_call_operand.hbm [shape: f32[1,128], index: 0, kind: input, shape index: {}]   ;;  %s571_s1 = inlined_call_operand.vmem [shape: f32[32,128], index: 1, kind: input, shape index: {}]   ;;  %s572_s2 = inlined_call_operand.vmem [shape: f32[32,1], index: 2, kind: input, shape index: {}]   ;;  %s573_s3 = inlined_call_operand.<no memory space> [shape: f32[1,1], index: 3, kind: input, shape index: {}]   ;;  %s574_s4 = inlined_call_operand.hbm [shape: f32[1,128], index: 4, kind: input, shape index: {}]   ;;  %s575_s5 = inlined_call_operand.vmem [shape: f32[16,128], index: 5, kind: input, shape index: {}]   ;;  %s576_s6 = inlined_call_operand.hbm [shape: f32[16,128], index: 6, kind: input, shape index: {}]   ;;  %s577_s7 = inlined_call_operand.hbm [shape: f32[1,128], index: 7, kind: output, shape index: {0}]   ;;  %s578_s8 = inlined_call_operand.hbm [shape: f32[1,128], index: 8, kind: output, shape index: {1}]   ;;  %s579_s9 = inlined_call_operand.hbm [shape: f32[1,1], index: 9, kind: output, shape index: {2}]  }
   0x1   :  { %17 = vsyncpa [#allocation7], 0 }
   0x2   :  { %18 = vsyncpa [#allocation5], 0 }
   0x3   :  { %19 = vsyncpa [#allocation11], 0  ;;  %s403_s30 = smov [#allocation6]   ;;  %s404_s11 = smov [#allocation3]  }
   0x4   :  { %s42_s10 = sshll.u32 %s403_s30, 4  ;;  %s26_s12 = sshll.u32 %s404_s11, 4  ;;  %s43_s10 = int_to_ptr.vmem [resolvable:$true] %s42_s10  ;;  %s27_s12 = int_to_ptr.vmem [resolvable:$true] %s26_s12 }
   0x5   :  { %s263_s15 = scalar_lea.hbm %s574_s4, 16 }
   0x6   :  { %p264_p0 = scmp.ne.s32.totalorder %s574_s4, %s263_s15  ;;  %p267_p1 = scmp.lt.u32.totalorder %s263_s15, %s574_s4 }
   0x8   :  { %p269_p2 = pnand %p267_p1, %p264_p0 }
   0xa   :  { %272 = shalt.err (!%p269_p2)
}
   0xb   :  { %s273_s20 = scalar_lea.vmem %s43_s10, 16  ;;  %s277_s21 = scalar_lea.vmem %s43_s10, 32 }
   0xc   :  { %p274_p3 = scmp.ne.s32.totalorder %s43_s10, %s273_s20  ;;  %p278_p4 = scmp.lt.s32.totalorder %s43_s10, %s43_s10 }
   0xd   :  { %p279_p5 = scmp.lt.s32.totalorder %s277_s21, %s273_s20 }
   0xf   :  { %p280_p6 = por %p279_p5, %p278_p4 }
  0x11   :  { %p281_p7 = pnand %p280_p6, %p274_p3 }
  0x13   :  { %284 = shalt.err (!%p281_p7)
}
  0x14   :  { %45 = dma.hbm_to_vmem [thread:$0]  %s574_s4, 16, %s43_s10, [#allocation7]  }
  0x15   :  { %s285_s26 = scalar_lea.hbm %s570_s0, 16 }
  0x16   :  { %p286_p8 = scmp.ne.s32.totalorder %s570_s0, %s285_s26  ;;  %p289_p9 = scmp.lt.u32.totalorder %s285_s26, %s570_s0 }
  0x18   :  { %p291_p10 = pnand %p289_p9, %p286_p8 }
  0x1a   :  { %294 = shalt.err (!%p291_p10)
}
  0x1b   :  { %s295_s11 = scalar_lea.vmem %s27_s12, 16  ;;  %s299_s13 = scalar_lea.vmem %s27_s12, 32 }
  0x1c   :  { %p296_p11 = scmp.ne.s32.totalorder %s27_s12, %s295_s11  ;;  %p300_p12 = scmp.lt.s32.totalorder %s27_s12, %s27_s12 }
  0x1d   :  { %p301_p13 = scmp.lt.s32.totalorder %s299_s13, %s295_s11 }
  0x1f   :  { %p302_p0 = por %p301_p13, %p300_p12 }
  0x21   :  { %p303_p1 = pnand %p302_p0, %p296_p11 }
  0x23   :  { %306 = shalt.err (!%p303_p1)
}
  0x24   :  { %29 = dma.hbm_to_vmem [thread:$0]  %s570_s0, 16, %s27_s12, [#allocation4]  }
  0x25   :  { %s405_s14 = smov [#allocation8]   ;;  %s307_s18 = scalar_lea.hbm %s576_s6, 256 }
  0x26   :  { %s53_s15 = sshll.u32 %s405_s14, 4  ;;  %p308_p2 = scmp.ne.s32.totalorder %s576_s6, %s307_s18  ;;  %s54_s15 = int_to_ptr.vmem [resolvable:$true] %s53_s15 }
  0x27   :  { %p311_p3 = scmp.lt.u32.totalorder %s307_s18, %s576_s6 }
  0x29   :  { %p313_p4 = pnand %p311_p3, %p308_p2 }
  0x2b   :  { %316 = shalt.err (!%p313_p4)
}
  0x2c   :  { %s317_s23 = scalar_lea.vmem %s54_s15, 256  ;;  %p322_p6 = scmp.lt.s32.totalorder %s54_s15, %s54_s15 }
  0x2d   :  { %p318_p5 = scmp.ne.s32.totalorder %s54_s15, %s317_s23  ;;  %p323_p7 = scmp.lt.s32.totalorder %s317_s23, %s317_s23 }
  0x2f   :  { %p324_p8 = por %p323_p7, %p322_p6 }
  0x31   :  { %p325_p9 = pnand %p324_p8, %p318_p5 }
  0x33   :  { %328 = shalt.err (!%p325_p9)
}
  0x34   :  { %s406_s0 = smov 128   ;;  %s407_s12 = smov 8  }
  0x35   :  { %59 = dma.hbm_to_vmem [thread:$0]  %s576_s6, 256, %s54_s15, [#allocation7], %s406_s0, %s406_s0, %s407_s12  }
  0x36   :  { %395 = dma.done.wait [#allocation4], 16  }
  0x37   :  { %396 = vsyncadd [#allocation4], 4294967280 }
  0x38   :  { %397 = dma.done.wait [#allocation7], 272  }
  0x39   :  { %398 = vsyncadd [#allocation7], 4294967024  ;;  %v408_v0 = vmov 0   ;;  %v75_v1 = vld [vmem:[%s572_s2 + $0x10] sm:$0xff]  ;;  %v73_v2 = vld [vmem:[%s572_s2] sm:$0xff]  ;;  %v111_v41 = vstv %s573_s3  ;;  %vm165_vm0 = vcmask 1040384  }
  0x3a   :  { %246 = vset.pattern.permute.xlu1 %v408_v0  ;;  %245 = vset.pattern.permute.xlu0 %v408_v0  ;;  %v76_v3 = vld [vmem:[%s572_s2 + $0x18] sm:$0xff]  ;;  %v74_v4 = vld [vmem:[%s572_s2 + $0x8] sm:$0xff]  ;;  %v144_v5 = vld [vmem:[%s575_s5] sm:$0xff]  ;;  %vm180_vm1 = vcmask 0   ;;  %s411_s0 = smov [#allocation9]  }
  0x3b   :  { %90 = vperm.xlu1 %246, %v75_v1   ;;  %80 = vperm.xlu0 %245, %v73_v2   ;;  %v145_v6 = vld [vmem:[%s575_s5 + $0x8] sm:$0xff]  ;;  %v69_v16 = vld [vmem:[%s571_s1] sm:$0xff]  ;;  %v71_v19 = vld [vmem:[%s571_s1 + $0x10] sm:$0xff]  ;;  %s193_s12 = sshll.u32 %s411_s0, 4  ;;  %s194_s12 = int_to_ptr.vmem [resolvable:$true] %s193_s12 }
  0x3c   :  { %v146_v7 = vld [vmem:[#allocation8] sm:$0xff]  ;;  %v147_v8 = vld [vmem:[#allocation8 + $0x8] sm:$0xff]  ;;  %v72_v24 = vld [vmem:[%s571_s1 + $0x18] sm:$0xff] }
  0x3d   :  { %v148_v9 = vmul.f32 %v146_v7, %v144_v5  ;;  %v149_v10 = vmul.f32 %v147_v8, %v145_v6  ;;  %v70_v17 = vld [vmem:[%s571_s1 + $0x8] sm:$0xff]  ;;  %v119_v33 = vld [vmem:[#allocation6] sm:$0x1]  ;;  %v130_v63 = vld [vmem:[#allocation3] sm:$0x1]  ;;  %s410_s1 = smov [#allocation10]  }
  0x3e   :  { %v231_v37 = vmul.f32 -1.442695, %v119_v33  ;;  %v136_v2 = vsub.f32 1.0, %v130_v63  ;;  %s203_s3 = sshll.u32 %s410_s1, 4  ;;  %s204_s3 = int_to_ptr.vmem [resolvable:$true] %s203_s3 }
  0x3f   :  { %95 = vperm.xlu1 %246, %v76_v3   ;;  %85 = vperm.xlu0 %245, %v74_v4   ;;  %v150_v11 = vadd.f32 %v149_v10, %v148_v9  ;;  %v409_v9 = vmov 0.0   ;;  %s329_s24 = scalar_lea.vmem %s204_s3, 16  ;;  %s333_s25 = scalar_lea.vmem %s204_s3, 32 }
  0x40   :  { %247 = vpow2.f32 %v231_v37  ;;  %181 = vst.msk [vmem:[#allocation12] sm:$0x1] %vm180_vm1, %v409_v9  ;;  %p330_p10 = scmp.ne.s32.totalorder %s204_s3, %s329_s24  ;;  %p334_p11 = scmp.lt.s32.totalorder %s204_s3, %s204_s3 }
  0x41   :  { %v151_v12 = vrot.slane %v150_v11, 4  ;;  %p335_p12 = scmp.lt.s32.totalorder %s333_s25, %s329_s24 }
  0x43   :  { %v152_v13 = vadd.f32 %v151_v12, %v150_v11  ;;  %p336_p13 = por %p335_p12, %p334_p11 }
  0x45   :  { %v153_v18 = vrot.slane %v152_v13, 2  ;;  %p337_p0 = pnand %p336_p13, %p330_p10 }
  0x47   :  { %v154_v27 = vadd.f32 %v153_v18, %v152_v13 }
  0x49   :  { %v155_v31 = vrot.slane %v154_v27, 1 }
  0x4a   :  { %v248_v45 = vpop.eup %247 }
  0x4b   :  { %v156_v35 = vadd.f32 %v155_v31, %v154_v27  ;;  %v123_v47 = vadd.f32 1.0, %v248_v45 }
  0x4d   :  { %v232_v39 = vmul.f32 -1.442695, %v156_v35 }
  0x4f   :  { %249 = vpow2.f32 %v232_v39 }
  0x59   :  { %v250_v46 = vpop.eup %249 }
  0x5a   :  { %v160_v48 = vadd.f32 1.0, %v250_v46 }
  0xba   :  { %v91_v14 = vpop.permute.xlu1 %90  ;;  %v81_v15 = vpop.permute.xlu0 %80 }
  0xbb   :  { %v98_v21 = vmul.f32 %v81_v15, %v69_v16  ;;  %v100_v25 = vmul.f32 %v91_v14, %v71_v19 }
  0xbe   :  { %v86_v20 = vpop.permute.xlu0 %85  ;;  %v96_v23 = vpop.permute.xlu1 %95 }
  0xbf   :  { %v99_v22 = vmul.f32 %v86_v20, %v70_v17  ;;  %v101_v28 = vmul.f32 %v96_v23, %v72_v24 }
  0xc1   :  { %v102_v26 = vadd.f32 %v99_v22, %v98_v21 }
  0xc3   :  { %v103_v29 = vadd.f32 %v102_v26, %v100_v25 }
  0xc5   :  { %v104_v30 = vadd.f32 %v103_v29, %v101_v28 }
  0xc7   :  { %v105_v32 = vrot.slane %v104_v30, 4 }
  0xc9   :  { %v106_v34 = vadd.f32 %v105_v32, %v104_v30 }
  0xcb   :  { %v107_v36 = vrot.slane %v106_v34, 2 }
  0xcd   :  { %v108_v38 = vadd.f32 %v107_v36, %v106_v34 }
  0xcf   :  { %v109_v40 = vrot.slane %v108_v38, 1 }
  0xd1   :  { %v110_v42 = vadd.f32 %v109_v40, %v108_v38 }
  0xd3   :  { %v112_v43 = vadd.f32 %v111_v41, %v110_v42 }
  0xd5   :  { %v230_v44 = vmul.f32 -1.442695, %v112_v43 }
  0xd7   :  { %251 = vpow2.f32 %v230_v44 }
  0xd8   :  { %253 = vrcp.f32 %v123_v47 }
  0xd9   :  { %255 = vrcp.f32 %v160_v48 }
  0xe1   :  { %v252_v49 = vpop.eup %251 }
  0xe2   :  { %v116_v50 = vadd.f32 1.0, %v252_v49  ;;  %v254_v51 = vpop.eup %253 }
  0xe3   :  { %v256_v52 = vpop.eup %255  ;;  %v127_v53 = vmul.f32 0.5, %v254_v51 }
  0xe4   :  { %257 = vrcp.f32 %v116_v50 }
  0xee   :  { %v258_v54 = vpop.eup %257 }
  0xef   :  { %v163_v55 = vsub.f32 %v256_v52, %v258_v54  ;;  %v126_v56 = vmul.f32 0.5, %v258_v54 }
  0xf1   :  { %v164_v57 = vand.u32 2147483647, %v163_v55  ;;  %v128_v58 = vadd.f32 %v127_v53, %v126_v56 }
  0xf3   :  { %v166_v59 = vsel %vm165_vm0, %v164_v57, 0.0  ;;  %v131_v60 = vmax.f32 %v128_v58, 1e-07  ;;  %129 = vst [vmem:[#allocation9] sm:$0x1] %v128_v58 }
  0xf4   :  { %167 = vadd.xlane.f32.xlu0 %v166_v59 }
  0xf5   :  { %v132_v61 = vmin.f32 %v131_v60, 0.9999999 }
  0xf7   :  { %259 = vlog2.f32 %v132_v61  ;;  %v137_v62 = vsub.f32 1.0, %v132_v61 }
  0xf9   :  { %261 = vlog2.f32 %v137_v62 }
 0x101   :  { %v260_v0 = vpop.eup %259 }
 0x102   :  { %v134_v1 = vmul.f32 0.6931472, %v260_v0 }
 0x103   :  { %v262_v3 = vpop.eup %261 }
 0x104   :  { %v139_v4 = vmul.f32 0.6931472, %v262_v3  ;;  %v135_v5 = vmul.f32 %v134_v1, %v130_v63 }
 0x106   :  { %v140_v6 = vmul.f32 %v139_v4, %v136_v2 }
 0x108   :  { %v141_v7 = vadd.f32 %v140_v6, %v135_v5 }
 0x10a   :  { %v142_v8 = vsub.f32 0.0, %v141_v7 }
 0x10c   :  { %143 = vst [vmem:[#allocation10] sm:$0x1] %v142_v8 }
 0x10d   :  { %340 = shalt.err (!%p337_p0)
}
 0x10e   :  { %s341_s28 = scalar_lea.hbm %s578_s8, 16 }
 0x10f   :  { %p342_p1 = scmp.ne.s32.totalorder %s578_s8, %s341_s28  ;;  %p345_p2 = scmp.lt.u32.totalorder %s341_s28, %s578_s8 }
 0x111   :  { %p347_p3 = pnand %p345_p2, %p342_p1 }
 0x113   :  { %350 = shalt.err (!%p347_p3)
}
 0x114   :  { %206 = dma.vmem_to_hbm [thread:$0]  %s204_s3, 16, %s578_s8, [#allocation11]  }
 0x115   :  { %s351_s10 = scalar_lea.vmem %s194_s12, 16  ;;  %s355_s14 = scalar_lea.vmem %s194_s12, 32 }
 0x116   :  { %p352_p4 = scmp.ne.s32.totalorder %s194_s12, %s351_s10  ;;  %p356_p5 = scmp.lt.s32.totalorder %s194_s12, %s194_s12 }
 0x117   :  { %p357_p6 = scmp.lt.s32.totalorder %s355_s14, %s351_s10 }
 0x119   :  { %p358_p7 = por %p357_p6, %p356_p5 }
 0x11b   :  { %p359_p8 = pnand %p358_p7, %p352_p4 }
 0x11d   :  { %362 = shalt.err (!%p359_p8)
}
 0x11e   :  { %s363_s16 = scalar_lea.hbm %s577_s7, 16 }
 0x11f   :  { %p364_p9 = scmp.ne.s32.totalorder %s577_s7, %s363_s16  ;;  %p367_p10 = scmp.lt.u32.totalorder %s363_s16, %s577_s7 }
 0x121   :  { %p369_p11 = pnand %p367_p10, %p364_p9 }
 0x123   :  { %372 = shalt.err (!%p369_p11)
}
 0x124   :  { %196 = dma.vmem_to_hbm [thread:$0]  %s194_s12, 16, %s577_s7, [#allocation5]   ;;  %v182_v17 = vld [vmem:[#allocation12] sm:$0x1] }
 0x125   :  { %s412_s21 = smov [#allocation12]  }
 0x126   :  { %s213_s22 = sshll.u32 %s412_s21, 4  ;;  %s214_s22 = int_to_ptr.vmem [resolvable:$true] %s213_s22 }
 0x127   :  { %s373_s1 = scalar_lea.vmem %s214_s22, 16  ;;  %s377_s7 = scalar_lea.vmem %s214_s22, 32 }
 0x128   :  { %p374_p12 = scmp.ne.s32.totalorder %s214_s22, %s373_s1  ;;  %p378_p13 = scmp.lt.s32.totalorder %s214_s22, %s214_s22 }
 0x129   :  { %p379_p0 = scmp.lt.s32.totalorder %s377_s7, %s373_s1 }
 0x12b   :  { %p380_p1 = por %p379_p0, %p378_p13 }
 0x12d   :  { %p381_p2 = pnand %p380_p1, %p374_p12 }
 0x181   :  { %v168_v10 = vpop.xlane.xlu0 %167 }
 0x182   :  { %v169_v11 = vrot.slane %v168_v10, 4 }
 0x184   :  { %v170_v12 = vadd.f32 %v169_v11, %v168_v10 }
 0x186   :  { %v171_v13 = vrot.slane %v170_v12, 2 }
 0x188   :  { %v172_v14 = vadd.f32 %v171_v13, %v170_v12 }
 0x18a   :  { %v173_v15 = vrot.slane %v172_v14, 1 }
 0x18c   :  { %v174_v16 = vadd.f32 %v173_v15, %v172_v14 }
 0x18e   :  { %233 = vpush %v174_v16 }
 0x1bf   :  { %s234_s23 = spop %233 }
 0x1c0   :  { %v183_v18 = vstv %s234_s23 }
 0x1c1   :  { %v184_v19 = vadd.f32 %v183_v18, %v182_v17 }
 0x1c3   :  { %186 = vst.msk [vmem:[#allocation12] sm:$0x1] %vm180_vm1, %v184_v19 }
 0x1c4   :  { %384 = shalt.err (!%p381_p2)
}
 0x1c5   :  { %s385_s12 = scalar_lea.hbm %s579_s9, 16 }
 0x1c6   :  { %p386_p3 = scmp.ne.s32.totalorder %s579_s9, %s385_s12  ;;  %p389_p4 = scmp.lt.u32.totalorder %s385_s12, %s579_s9 }
 0x1c8   :  { %p391_p5 = pnand %p389_p4, %p386_p3 }
 0x1ca   :  { %394 = shalt.err (!%p391_p5)
}
 0x1cb   :  { %216 = dma.vmem_to_hbm [thread:$0]  %s214_s22, 16, %s579_s9, [#allocation11]  }
 0x1cc   :  { %399 = dma.done.wait [#allocation5], 16  }
 0x1cd   :  { %400 = vsyncadd [#allocation5], 4294967280 }
 0x1ce   :  { %401 = dma.done.wait [#allocation11], 32  }
 0x1cf   :  { %402 = vsyncadd [#allocation11], 4294967264 }
 0x1d0   :  { %226 = vsyncpa [#allocation4], 1 }
 0x1d1   :  { %227 = vsyncpa [#allocation7], 1 }
 0x1d2   :  { %228 = vsyncpa [#allocation5], 1 }
 0x1d3   :  { %229 = vsyncpa [#allocation11], 1 }

</bundles_post_ra>
